<compile_context>
chip_gen: v7x
topology: tpu7x:2x2x1
jax: 0.10.0
libtpu: 0.0.40
codegen_flags: <defaults>
</compile_context>

<pallas_src>
import functools

import jax
import jax.numpy as jnp
from jax import lax
from jax.experimental import pallas as pl
from jax.experimental.pallas import tpu as pltpu


def _value_kernel(x_ref, w1_ref, b1_ref, w2_ref, b2_ref, w3_ref, b3_ref, o_ref):
    # x_ref : (TB, S)  f32  -- natural row-major batch block (no wrapper transpose)
    # w1_ref: (H1, S)  f32   b1_ref: (H1, 1) f32
    # w2_ref: (H2, H1) f32   b2_ref: (H2, 1) f32
    # w3_ref: (H2, 1)  f32   b3_ref: (1,)    f32 (SMEM scalar)
    # o_ref : (1, TB)  f32  -- lane-dense output row (batch on the lane axis)
    tb, _ = x_ref.shape

    # Resident weights: cast f32 -> bf16 once per grid step (hoisted out of the
    # chunk loop); biases stay f32 columns that lane-broadcast on the VPU.
    w1b = w1_ref[...].astype(jnp.bfloat16)           # (H1, S)
    w2b = w2_ref[...].astype(jnp.bfloat16)           # (H2, H1)
    b1 = b1_ref[...]                                  # (H1, 1)
    b2 = b2_ref[...]                                  # (H2, 1)
    w3 = w3_ref[...]                                  # (H2, 1)
    b3 = b3_ref[0]                                    # scalar

    # Chunk the lane (batch) axis: 256 lanes matches the 2x256^2 MXU on v6e/v7x
    # and keeps per-chunk f32 intermediates within the 64-vreg file (bounded
    # spills).  tb is either <= 256 or a multiple of 256 by construction.
    chunk = min(256, tb)
    n_chunks = tb // chunk

    for c in range(n_chunks):                         # static unroll (n <= 8)
        start = c * chunk                             # static offsets -> cheap slices
        xc = x_ref[start:start + chunk, :].astype(jnp.bfloat16)   # (chunk, S) bf16

        # Layer 1 on the MXU as an NT matmul (contract S of both operands):
        # (H1, S) x (chunk, S)^T -> (H1, chunk).  Batch lands on the lane axis,
        # so no explicit transpose op is needed anywhere.
        h1 = lax.dot_general(w1b, xc, (((1,), (1,)), ((), ())),
                             preferred_element_type=jnp.float32)
        h1 = jnp.maximum(h1 + b1, 0.0)

        # Layer 2: (H2, H1) @ (H1, chunk) on the MXU, f32 accumulation.
        h2 = jnp.dot(w2b, h1.astype(jnp.bfloat16),
                     preferred_element_type=jnp.float32)
        h2 = jnp.maximum(h2 + b2, 0.0)

        # Layer 3 (N == 1): VPU multiply + sublane reduce instead of a nearly
        # empty MXU pass; result is already the lane-dense (1, chunk) row.
        out = jnp.sum(h2 * w3, axis=0, keepdims=True) + b3
        o_ref[:, start:start + chunk] = out.astype(o_ref.dtype)


def _choose_block_b(b_pad):
    # b_pad is a multiple of 128 (and of 256 when > 128).  Prefer >= 2 fat grid
    # steps (megacore on v7x, intra-core pipelining everywhere) but keep the step
    # count small: per-step overhead (~0.35us) dominates this tiny network.
    if b_pad <= 256:
        return b_pad
    for tb in (2048, 1024, 512, 256):
        if tb <= b_pad and b_pad % tb == 0 and b_pad // tb >= 2:
            return tb
    return b_pad


@functools.partial(jax.jit, static_argnames=("block_b",))
def value_network_forward(state, params, block_b=None):
    """state: [B, S] float32. Returns [B, 1] float32 (PyTorch ValueNetwork semantics)."""
    w1, b1, w2, b2, w3, b3 = params
    B, S = state.shape
    H1 = w1.shape[0]
    H2 = w2.shape[0]

    if block_b is not None:
        tb = int(block_b)
        if tb % 128 != 0:
            raise ValueError("block_b must be a multiple of 128")
        b_pad = -(-B // tb) * tb
    else:
        b_pad = 128 if B <= 128 else -(-B // 256) * 256
        tb = _choose_block_b(b_pad)
    num_blocks = b_pad // tb

    # Only pad when the batch is not already lane friendly; no transpose / cast
    # happens in the wrapper.  Padded rows compute finite garbage that is sliced
    # off below and never consumed.
    x = state if b_pad == B else jnp.pad(state, ((0, b_pad - B), (0, 0)))

    flops = 2 * b_pad * (S * H1 + H1 * H2 + H2)
    bytes_accessed = (b_pad * S * 4                            # x (f32)
                      + (H1 * S + H2 * H1 + H1 + H2 + H2 + 1) * 4  # weights/biases
                      + b_pad * 4)                             # output (f32)

    resident = dict(pipeline_mode=pl.Buffered(1))   # constant index_map -> 1 buffer

    out = pl.pallas_call(
        _value_kernel,
        out_shape=jax.ShapeDtypeStruct((1, b_pad), jnp.float32),
        grid_spec=pltpu.PrefetchScalarGridSpec(
            num_scalar_prefetch=0,
            grid=(num_blocks,),
            in_specs=[
                pl.BlockSpec((tb, S), lambda i: (i, 0)),               # x rows (f32)
                pl.BlockSpec((H1, S), lambda i: (0, 0), **resident),    # W1 resident
                pl.BlockSpec((H1, 1), lambda i: (0, 0), **resident),    # b1 column
                pl.BlockSpec((H2, H1), lambda i: (0, 0), **resident),   # W2 resident
                pl.BlockSpec((H2, 1), lambda i: (0, 0), **resident),    # b2 column
                pl.BlockSpec((H2, 1), lambda i: (0, 0), **resident),    # w3 column
                pl.BlockSpec(memory_space=pltpu.MemorySpace.SMEM),      # b3 scalar
            ],
            out_specs=pl.BlockSpec((1, tb), lambda i: (0, i)),          # lane-dense row
        ),
        compiler_params=pltpu.CompilerParams(
            dimension_semantics=("parallel",),
        ),
        cost_estimate=pl.CostEstimate(
            flops=flops, transcendentals=0, bytes_accessed=bytes_accessed),
    )(x, w1, b1, w2, b2, w3, b3)

    # (1, b_pad) row-major has the identical flat layout as (b_pad, 1): this
    # reshape is free.  The slice only exists when B needed padding.
    out = out.reshape(b_pad, 1)
    return out if b_pad == B else out[:B]


def init_value_network_params(key, state_size):
    """Deterministic init matching nn.Linear's uniform(-1/sqrt(in), 1/sqrt(in)).

    Returns (w1, b1, w2, b2, w3, b3) with
      w1: (H1, S)  b1: (H1, 1)  w2: (H2, H1)  b2: (H2, 1)  w3: (H2, 1)  b3: (1,)
    """
    h1 = h2 = 8 * state_size

    def lin(k, fan_in, fan_out):
        kw, kb = jax.random.split(k)
        bound = 1.0 / (fan_in ** 0.5)
        w = jax.random.uniform(kw, (fan_out, fan_in), jnp.float32, -bound, bound)
        b = jax.random.uniform(kb, (fan_out,), jnp.float32, -bound, bound)
        return w, b

    key, k1, k2, k3 = jax.random.split(key, 4)
    w1, b1 = lin(k1, state_size, h1)
    w2, b2 = lin(k2, h1, h2)
    w3, b3 = lin(k3, h2, 1)
    return (w1, b1.reshape(h1, 1),
            w2, b2.reshape(h2, 1),
            w3.reshape(h2, 1), b3.reshape(1))


if __name__ == "__main__":
    state_size = 16                      # -> hidden sizes [128, 128] (8 * state_size)
    params = init_value_network_params(jax.random.PRNGKey(0), state_size)
    w1, b1, w2, b2, w3, b3 = params

    def ref_f32(x):
        hp = lax.Precision.HIGHEST
        h1f = jnp.maximum(jnp.dot(x, w1.T, precision=hp) + b1[:, 0], 0.0)
        h2f = jnp.maximum(jnp.dot(h1f, w2.T, precision=hp) + b2[:, 0], 0.0)
        return jnp.dot(h2f, w3, precision=hp) + b3

    def ref_mixed(x):
        xb = x.astype(jnp.bfloat16)
        h1m = jnp.maximum(
            jnp.dot(xb, w1.astype(jnp.bfloat16).T,
                    preferred_element_type=jnp.float32) + b1[:, 0], 0.0)
        h2m = jnp.maximum(
            jnp.dot(h1m.astype(jnp.bfloat16), w2.astype(jnp.bfloat16).T,
                    preferred_element_type=jnp.float32) + b2[:, 0], 0.0)
        return jnp.sum(h2m * w3[:, 0], axis=-1, keepdims=True) + b3

    configs = [
        (512, None),   # auto: b_pad=512, tb=256 -> 2 grid steps (megacore on v7x)
        (512, 512),    # single fat step, 2 in-kernel 256-lane chunks
        (100, None),   # non-lane-multiple batch -> pad to 128, slice back
    ]
    for batch, block_b in configs:
        k_state = jax.random.fold_in(jax.random.PRNGKey(0), batch)
        state = jax.random.normal(k_state, (batch, state_size), dtype=jnp.float32)

        out = value_network_forward(state, params, block_b=block_b)
        out = jax.block_until_ready(out)

        assert out.shape == (batch, 1) and out.dtype == jnp.float32
        # Tight check vs. a reference with the kernel's mixed precision
        # (bf16 MXU inputs, f32 accumulation / bias / relu / final reduce).
        assert jnp.allclose(out, ref_mixed(state), atol=5e-3, rtol=5e-3), (batch, block_b)
        # Loose check vs. plain f32 PyTorch-style forward (bf16 matmul inputs
        # are not bit-parity with nn.Linear).
        assert jnp.allclose(out, ref_f32(state), atol=5e-2, rtol=5e-2), (batch, block_b)

    print("KERNEL_OK")
</pallas_src>

<mosaic_0001>
module attributes {stable_mosaic.version = 11 : i64} {
  func.func @_value_kernel(%arg0: i32, %arg1: memref<256x16xf32, #tpu.memory_space<vmem>>, %arg2: memref<128x16xf32, #tpu.memory_space<vmem>>, %arg3: memref<128x1xf32, #tpu.memory_space<vmem>>, %arg4: memref<128x128xf32, #tpu.memory_space<vmem>>, %arg5: memref<128x1xf32, #tpu.memory_space<vmem>>, %arg6: memref<128x1xf32, #tpu.memory_space<vmem>>, %arg7: memref<1xf32, #tpu.memory_space<smem>>, %arg8: memref<1x256xf32, #tpu.memory_space<vmem>>) attributes {dimension_semantics = [#tpu.dimension_semantics<parallel>], iteration_bounds = array<i64: 2>, scalar_prefetch = 0 : i64, scratch_operands = 0 : i64, tpu.core_type = #tpu.core_type<tc>, window_params = [{transform_indices = @transform_0, window_bounds = array<i64: 256, 16>}, {pipeline_mode = #tpu.pipeline_mode<synchronous>, transform_indices = @transform_1, window_bounds = array<i64: 128, 16>}, {pipeline_mode = #tpu.pipeline_mode<synchronous>, transform_indices = @transform_2, window_bounds = array<i64: 128, 1>}, {pipeline_mode = #tpu.pipeline_mode<synchronous>, transform_indices = @transform_3, window_bounds = array<i64: 128, 128>}, {pipeline_mode = #tpu.pipeline_mode<synchronous>, transform_indices = @transform_4, window_bounds = array<i64: 128, 1>}, {pipeline_mode = #tpu.pipeline_mode<synchronous>, transform_indices = @transform_5, window_bounds = array<i64: 128, 1>}, {transform_indices = @transform_6, window_bounds = array<i64: 1>}, {transform_indices = @transform_7, window_bounds = array<i64: 1, 256>}]} {
    %c0 = arith.constant 0 : index
    %c0_0 = arith.constant 0 : index
    %0 = vector.load %arg2[%c0, %c0_0] : memref<128x16xf32, #tpu.memory_space<vmem>>, vector<128x16xf32>
    %1 = arith.truncf %0 : vector<128x16xf32> to vector<128x16xbf16>
    %c0_1 = arith.constant 0 : index
    %c0_2 = arith.constant 0 : index
    %2 = vector.load %arg4[%c0_1, %c0_2] : memref<128x128xf32, #tpu.memory_space<vmem>>, vector<128x128xf32>
    %3 = arith.truncf %2 : vector<128x128xf32> to vector<128x128xbf16>
    %c0_3 = arith.constant 0 : index
    %c0_4 = arith.constant 0 : index
    %4 = vector.load %arg3[%c0_3, %c0_4] : memref<128x1xf32, #tpu.memory_space<vmem>>, vector<128x1xf32>
    %c0_5 = arith.constant 0 : index
    %c0_6 = arith.constant 0 : index
    %5 = vector.load %arg5[%c0_5, %c0_6] : memref<128x1xf32, #tpu.memory_space<vmem>>, vector<128x1xf32>
    %c0_7 = arith.constant 0 : index
    %c0_8 = arith.constant 0 : index
    %6 = vector.load %arg6[%c0_7, %c0_8] : memref<128x1xf32, #tpu.memory_space<vmem>>, vector<128x1xf32>
    %c0_9 = arith.constant 0 : index
    %7 = memref.load %arg7[%c0_9] : memref<1xf32, #tpu.memory_space<smem>>
    %c0_10 = arith.constant 0 : index
    %c0_11 = arith.constant 0 : index
    %8 = vector.load %arg1[%c0_10, %c0_11] : memref<256x16xf32, #tpu.memory_space<vmem>>, vector<256x16xf32>
    %9 = arith.truncf %8 : vector<256x16xf32> to vector<256x16xbf16>
    %cst = arith.constant dense<0.000000e+00> : vector<128x256xf32>
    %10 = tpu.matmul %1, %9, %cst {dimension_numbers = #tpu.dot_dimension_numbers<[1], [1], [0], [0], [0, 0, 1, 0], [], []>} : vector<128x16xbf16>, vector<256x16xbf16>, vector<128x256xf32> -> vector<128x256xf32>
    %11 = vector.broadcast %4 : vector<128x1xf32> to vector<128x256xf32>
    %12 = arith.addf %10, %11 : vector<128x256xf32>
    %cst_12 = arith.constant 0.000000e+00 : f32
    %13 = vector.broadcast %cst_12 : f32 to vector<128x256xf32>
    %14 = arith.maximumf %12, %13 : vector<128x256xf32>
    %15 = arith.truncf %14 : vector<128x256xf32> to vector<128x256xbf16>
    %cst_13 = arith.constant dense<0.000000e+00> : vector<128x256xf32>
    %16 = tpu.matmul %3, %15, %cst_13 {dimension_numbers = #tpu.dot_dimension_numbers<[1], [0], [0], [1], [0, 0, 1, 1], [], []>} : vector<128x128xbf16>, vector<128x256xbf16>, vector<128x256xf32> -> vector<128x256xf32>
    %17 = vector.broadcast %5 : vector<128x1xf32> to vector<128x256xf32>
    %18 = arith.addf %16, %17 : vector<128x256xf32>
    %cst_14 = arith.constant 0.000000e+00 : f32
    %19 = vector.broadcast %cst_14 : f32 to vector<128x256xf32>
    %20 = arith.maximumf %18, %19 : vector<128x256xf32>
    %21 = vector.broadcast %6 : vector<128x1xf32> to vector<128x256xf32>
    %22 = arith.mulf %20, %21 : vector<128x256xf32>
    %cst_15 = arith.constant dense<0.000000e+00> : vector<256xf32>
    %23 = vector.multi_reduction <add>, %22, %cst_15 [0] : vector<128x256xf32> to vector<256xf32>
    %24 = vector.shape_cast %23 : vector<256xf32> to vector<1x256xf32>
    %25 = vector.broadcast %7 : f32 to vector<1x256xf32>
    %26 = arith.addf %24, %25 : vector<1x256xf32>
    %c0_16 = arith.constant 0 : index
    %c0_17 = arith.constant 0 : index
    %27 = vector.load %arg8[%c0_16, %c0_17] : memref<1x256xf32, #tpu.memory_space<vmem>>, vector<1x256xf32>
    tpu.vector_store %arg8[%c0_16, %c0_17], %26 {strides = array<i32>} : memref<1x256xf32, #tpu.memory_space<vmem>>, vector<1x256xf32>,
    return
  }
  func.func @transform_0(%arg0: i32) -> (i32, i32) {
    %c0_i32 = arith.constant 0 : i32
    %c0_i32_0 = arith.constant 0 : i32
    return %arg0, %c0_i32 : i32, i32
  }
  func.func @transform_1(%arg0: i32) -> (i32, i32) {
    %c0_i32 = arith.constant 0 : i32
    %c0_i32_0 = arith.constant 0 : i32
    %c0_i32_1 = arith.constant 0 : i32
    return %c0_i32, %c0_i32_0 : i32, i32
  }
  func.func @transform_2(%arg0: i32) -> (i32, i32) {
    %c0_i32 = arith.constant 0 : i32
    %c0_i32_0 = arith.constant 0 : i32
    %c0_i32_1 = arith.constant 0 : i32
    return %c0_i32, %c0_i32_0 : i32, i32
  }
  func.func @transform_3(%arg0: i32) -> (i32, i32) {
    %c0_i32 = arith.constant 0 : i32
    %c0_i32_0 = arith.constant 0 : i32
    %c0_i32_1 = arith.constant 0 : i32
    return %c0_i32, %c0_i32_0 : i32, i32
  }
  func.func @transform_4(%arg0: i32) -> (i32, i32) {
    %c0_i32 = arith.constant 0 : i32
    %c0_i32_0 = arith.constant 0 : i32
    %c0_i32_1 = arith.constant 0 : i32
    return %c0_i32, %c0_i32_0 : i32, i32
  }
  func.func @transform_5(%arg0: i32) -> (i32, i32) {
    %c0_i32 = arith.constant 0 : i32
    %c0_i32_0 = arith.constant 0 : i32
    %c0_i32_1 = arith.constant 0 : i32
    return %c0_i32, %c0_i32_0 : i32, i32
  }
  func.func @transform_6(%arg0: i32) -> i32 {
    %c0_i32 = arith.constant 0 : i32
    %c0_i32_0 = arith.constant 0 : i32
    return %c0_i32 : i32
  }
  func.func @transform_7(%arg0: i32) -> (i32, i32) {
    %c0_i32 = arith.constant 0 : i32
    %c0_i32_0 = arith.constant 0 : i32
    return %c0_i32, %arg0 : i32, i32
  }
}

</mosaic_0001>

<bundles_post_ra>
// kernel: value_network_forward.1
= control target key start
LH: loop header
LB: loop body
LE: loop exit
PB: predicated region body
PF: predicated region fallthrough
CT: control target
= control target key end

     0   :  { %s1865_s0 = inlined_call_operand.vmem [shape: f32[512,16], index: 0, kind: input, shape index: {}]   ;;  %s1866_s1 = inlined_call_operand.vmem [shape: f32[128,16], index: 1, kind: input, shape index: {}]   ;;  %s1867_s2 = inlined_call_operand.vmem [shape: f32[128,1], index: 2, kind: input, shape index: {}]   ;;  %s1868_s3 = inlined_call_operand.vmem [shape: f32[128,128], index: 3, kind: input, shape index: {}]   ;;  %s1869_s4 = inlined_call_operand.vmem [shape: f32[128,1], index: 4, kind: input, shape index: {}]   ;;  %s1870_s5 = inlined_call_operand.vmem [shape: f32[128,1], index: 5, kind: input, shape index: {}]   ;;  %s1871_s6 = inlined_call_operand.<no memory space> [shape: f32[1], index: 6, kind: input, shape index: {}]   ;;  %s1872_s7 = inlined_call_operand.hbm [shape: f32[1,512], index: 7, kind: output, shape index: {}]  }
   0x1   :  { %12 = sst [smem:[#allocation2]] %s1871_s6 }
   0x2   :  { %13 = vsyncpa [#allocation4], 0 }
   0x3   :  { %15 = vsyncpa [#allocation4 + $0x1], 0  ;;  %s1434_s26 = smov 0   ;;  %s1436_s27 = smov 0  }
   0x4   :  { %s1438_s28 = smov 0   ;;  %s1440_s29 = smov 0  }
   0x5 LB: > { %s1219_s6 = sadd.s32 4294967295, %s1386_s29   ;;  %s1220_s30 = sadd.s32 4294967294, %s1386_s29   ;;  %s1386_s29 = sphi %s1440_s29, %s1878_s29   ;;  %s1382_s28 = sphi %s1438_s28, %s1877_s28   ;;  %s1378_s27 = sphi %s1436_s27, %s1876_s27   ;;  %s1374_s26 = sphi %s1434_s26, %s1875_s26  }
   0x6   : > { %s1457_s8 = sadd.s32 1, %s1386_s29   ;;  %s180_s9 = sadd.s32 1, %s1382_s28 }
   0x7   : > { %s177_s10 = ssub.s32 %s1386_s29, %s1457_s8  ;;  %p190_p0 = scmp.ne.s32.totalorder %s1382_s28, %s1378_s27 }
   0x8   : > { %p178_p1 = scmp.eq.s32.totalorder %s177_s10, 0  ;;  %p191_p2 = scmp.eq.s32.totalorder %s1219_s6, 1 }
   0x9   : > { %p196_p3 = scmp.ne.s32.totalorder %s1378_s27, %s1374_s26  ;;  %p197_p4 = scmp.eq.s32.totalorder %s1220_s30, 1 }
   0xa   : > { %s1467_s11 = scalar_select %p178_p1, %s1382_s28, %s180_s9  }
   0xb   : > { %p1469_p5 = por %p191_p2, %p190_p0  ;;  %p1473_p6 = por %p197_p4, %p196_p3 }
   0xc   : > { %p1223_p7 = scmp.ge.s32.totalorder %s1386_s29, 1  ;;  %p242_p8 = scmp.lt.s32.totalorder %s1386_s29, 3 }
   0xe   : > { %p243_p9 = pnand %p1223_p7, %p242_p8 }
   0xf   : > { %s1479_s14 = sshll.u32 (!%p243_p9), %s1219_s6, 5  ;;  %v282_v0 = vld [vmem:[%s1866_s1] sm:$0xff] (!%p243_p9)  ;;  %v283_v1 = vld [vmem:[%s1866_s1 + $0x8] sm:$0xff] (!%p243_p9)  ;;  %v1388_v3 = vmov (!%p243_p9), 0   ;;  %vm507_vm0 = vcmask (!%p243_p9), 130048   ;;  %v332_v5 = vld [vmem:[%s1867_s2 + $0x10] sm:$0xff] (!%p243_p9) }
  0x10   : > { %246 = sbr.rel (%p243_p9) target bundleno = 689 (0x2b1), region = 48  ;;  %p275_p10 = scmp.lt.s32.totalorder (!%p243_p9), %s1479_s14, 63  ;;  %v1488_v2 = vpack.c.bf16 (!%p243_p9), %v283_v1, %v282_v0  ;;  %1322 = vset.pattern.permute.xlu0 (!%p243_p9), %v1388_v3  ;;  %1323 = vset.pattern.permute.xlu1 (!%p243_p9), %v1388_v3  ;;  %v330_v4 = vld [vmem:[%s1867_s2] sm:$0xff] (!%p243_p9)  ;;  %v331_v6 = vld [vmem:[%s1867_s2 + $0x8] sm:$0xff] (!%p243_p9)  ;;  %v333_v7 = vld [vmem:[%s1867_s2 + $0x18] sm:$0xff] (!%p243_p9) }
  0x11   : > { %853 = vmatprep.mubr.bf16.mxu1 (!%p243_p9), %v1388_v3  ;;  %429 = vperm.xlu0 (!%p243_p9), %1322, %v330_v4   ;;  %v334_v8 = vld [vmem:[%s1867_s2 + $0x20] sm:$0xff] (!%p243_p9)  ;;  %v335_v18 = vld [vmem:[%s1867_s2 + $0x28] sm:$0xff] (!%p243_p9)  ;;  %v336_v22 = vld [vmem:[%s1867_s2 + $0x30] sm:$0xff] (!%p243_p9)  ;;  %s271_s19 = sand.u32 (!%p243_p9), 1, %s1378_s27   ;;  %s1823_s25 = scalar_lea.hbm (!%p243_p9), %s1872_s7, %s1479_s14 }
  0x12   : > { %1257 = vmatprep.mubr.msk.bf16.mxu0 (!%p243_p9), %vm507_vm0, %v1488_v2  ;;  %439 = vperm.xlu1 (!%p243_p9), %1323, %v332_v5   ;;  %v337_v24 = vld [vmem:[%s1867_s2 + $0x38] sm:$0xff] (!%p243_p9)  ;;  %v338_v27 = vld [vmem:[%s1867_s2 + $0x40] sm:$0xff] (!%p243_p9)  ;;  %v339_v30 = vld [vmem:[%s1867_s2 + $0x48] sm:$0xff] (!%p243_p9)  ;;  %s1224_s20 = sshll.u32 (!%p243_p9), %s271_s19, 1  ;;  %s1390_s9 = smov (!%p243_p9), [#allocation3]  }
  0x13   : > { %v340_v33 = vld [vmem:[%s1867_s2 + $0x50] sm:$0xff] (!%p243_p9)  ;;  %v341_v35 = vld [vmem:[%s1867_s2 + $0x58] sm:$0xff] (!%p243_p9)  ;;  %v342_v38 = vld [vmem:[%s1867_s2 + $0x60] sm:$0xff] (!%p243_p9)  ;;  %s273_s21 = scalar_lea.vmem (!%p243_p9), [#allocation3], %s1224_s20  ;;  %s1328_s10 = sshll.u32 (!%p243_p9), %s1390_s9, 4  ;;  %s1329_s10 = int_to_ptr.vmem [resolvable:$false] %s1328_s10 }
  0x14   : > { %v343_v41 = vld [vmem:[%s1867_s2 + $0x68] sm:$0xff] (!%p243_p9)  ;;  %v344_v44 = vld [vmem:[%s1867_s2 + $0x70] sm:$0xff] (!%p243_p9)  ;;  %v345_v46 = vld [vmem:[%s1867_s2 + $0x78] sm:$0xff] (!%p243_p9)  ;;  %s1161_s22 = sshll.u32 (!%p243_p9), %s273_s21, 4  ;;  %s1330_s15 = scalar_lea.vmem (!%p243_p9), %s1329_s10, 64  ;;  %s1825_s22 = int_to_ptr.vmem [resolvable:$true] %s1161_s22 }
  0x15   : > { %434 = vperm.xlu0 (!%p243_p9), %1322, %v331_v6   ;;  %v346_v49 = vld [vmem:[%s1869_s4] sm:$0xff] (!%p243_p9)  ;;  %v347_v52 = vld [vmem:[%s1869_s4 + $0x8] sm:$0xff] (!%p243_p9)  ;;  %v348_v55 = vld [vmem:[%s1869_s4 + $0x10] sm:$0xff] (!%p243_p9)  ;;  %s1324_s30 = scalar_lea.vmem (!%p243_p9), %s1825_s22, 32  ;;  %p1331_p0 = scmp.lt.s32.totalorder (!%p243_p9), %s1825_s22, %s1329_s10 }
  0x16   : > { %444 = vperm.xlu1 (!%p243_p9), %1323, %v333_v7   ;;  %v349_v57 = vld [vmem:[%s1869_s4 + $0x18] sm:$0xff] (!%p243_p9)  ;;  %v362_v60 = vld [vmem:[%s1870_s5] sm:$0xff] (!%p243_p9)  ;;  %v363_v63 = vld [vmem:[%s1870_s5 + $0x8] sm:$0xff] (!%p243_p9)  ;;  %p1325_p11 = scmp.ne.s32.totalorder (!%p243_p9), %s1825_s22, %s1324_s30  ;;  %p1332_p1 = scmp.lt.s32.totalorder (!%p243_p9), %s1330_s15, %s1324_s30 }
  0x17   : > { %s276_s23 = scalar_select %p275_p10, %s1479_s14, 63  ;;  %v350_v4 = vld [vmem:[%s1869_s4 + $0x20] sm:$0xff]  ;;  %v364_v6 = vld [vmem:[%s1870_s5 + $0x10] sm:$0xff] }
  0x18   : > { %p1326_p12 = pnand %p1325_p11, %p1469_p5  ;;  %p1333_p2 = por %p1332_p1, %p1331_p0 }
  0x19   : > { %s1226_s6 = sshll.u32 %s276_s23, 3  ;;  %449 = vperm.xlu0 %1322, %v334_v8  }
  0x1a   : > { %s1511_s16 = scalar_lea.vmem %s1865_s0, %s1226_s6  ;;  %454 = vperm.xlu1 %1323, %v335_v18   ;;  %s1147_s6 = scalar_lea.sflag [#allocation4], %s271_s19 }
  0x1b   : > { %v395_v9 = vld [vmem:[%s1511_s16 + $0x80] sm:$0xff]  ;;  %v396_v10 = vld [vmem:[%s1511_s16 + $0x88] sm:$0xff]  ;;  %v397_v14 = vld [vmem:[%s1511_s16 + $0x90] sm:$0xff]  ;;  %p1327_p13 = pneg %p1326_p12 }
  0x1c   : > { %v379_v11 = vld [vmem:[%s1511_s16] sm:$0xff]  ;;  %v419_v12 = vpack.c.bf16 %v396_v10, %v395_v9  ;;  %v380_v13 = vld [vmem:[%s1511_s16 + $0x8] sm:$0xff]  ;;  %v398_v15 = vld [vmem:[%s1511_s16 + $0x98] sm:$0xff] }
  0x1d   : > { %v411_v16 = vpack.c.bf16 %v380_v13, %v379_v11  ;;  %v420_v17 = vpack.c.bf16 %v398_v15, %v397_v14  ;;  %v381_v19 = vld [vmem:[%s1511_s16 + $0x10] sm:$0xff]  ;;  %v382_v20 = vld [vmem:[%s1511_s16 + $0x18] sm:$0xff]  ;;  %v399_v25 = vld [vmem:[%s1511_s16 + $0xa0] sm:$0xff]  ;;  %459 = vperm.xlu0 %1322, %v336_v22   ;;  %p1334_p3 = pnand %p1333_p2, %p1327_p13 }
  0x1e   : > { %1273 = vmatprep.subr.msk.bf16.mxu0 %vm507_vm0, %v419_v12  ;;  %v412_v23 = vpack.c.bf16 %v382_v20, %v381_v19  ;;  %v400_v26 = vld [vmem:[%s1511_s16 + $0xa8] sm:$0xff]  ;;  %464 = vperm.xlu1 %1323, %v337_v24   ;;  %v383_v31 = vld [vmem:[%s1511_s16 + $0x20] sm:$0xff]  ;;  %v401_v36 = vld [vmem:[%s1511_s16 + $0xb0] sm:$0xff] }
  0x1f   : > { %v533_v21 = vsel %vm507_vm0, %v411_v16, 0  ;;  %v421_v29 = vpack.c.bf16 %v400_v26, %v399_v25  ;;  %v384_v32 = vld [vmem:[%s1511_s16 + $0x28] sm:$0xff]  ;;  %v402_v37 = vld [vmem:[%s1511_s16 + $0xb8] sm:$0xff]  ;;  %v385_v42 = vld [vmem:[%s1511_s16 + $0x30] sm:$0xff] }
  0x20   : > { %1242 = vmatpush3.bf16.xpose.msra.mxu0 %v533_v21  ;;  %v536_v28 = vsel %vm507_vm0, %v412_v23, 0  ;;  %v413_v34 = vpack.c.bf16 %v384_v32, %v383_v31  ;;  %v422_v40 = vpack.c.bf16 %v402_v37, %v401_v36  ;;  %v386_v43 = vld [vmem:[%s1511_s16 + $0x38] sm:$0xff]  ;;  %v403_v47 = vld [vmem:[%s1511_s16 + $0xc0] sm:$0xff]  ;;  %v404_v48 = vld [vmem:[%s1511_s16 + $0xc8] sm:$0xff] }
  0x21   : > { %1274 = vmatprep.subr.msk.bf16.mxu0 %vm507_vm0, %v420_v17  ;;  %469 = vperm.xlu0 %1322, %v338_v27   ;;  %v414_v45 = vpack.c.bf16 %v386_v43, %v385_v42  ;;  %v423_v51 = vpack.c.bf16 %v404_v48, %v403_v47  ;;  %v387_v53 = vld [vmem:[%s1511_s16 + $0x40] sm:$0xff]  ;;  %v388_v54 = vld [vmem:[%s1511_s16 + $0x48] sm:$0xff]  ;;  %v405_v58 = vld [vmem:[%s1511_s16 + $0xd0] sm:$0xff] }
  0x22   : > { %474 = vperm.xlu1 %1323, %v339_v30   ;;  %v539_v39 = vsel %vm507_vm0, %v413_v34, 0  ;;  %v415_v56 = vpack.c.bf16 %v388_v54, %v387_v53  ;;  %v406_v59 = vld [vmem:[%s1511_s16 + $0xd8] sm:$0xff]  ;;  %v389_v0 = vld [vmem:[%s1511_s16 + $0x50] sm:$0xff]  ;;  %v407_v7 = vld [vmem:[%s1511_s16 + $0xe0] sm:$0xff] }
  0x23   : > { %v542_v50 = vsel %vm507_vm0, %v414_v45, 0  ;;  %v424_v62 = vpack.c.bf16 %v406_v59, %v405_v58  ;;  %v390_v1 = vld [vmem:[%s1511_s16 + $0x58] sm:$0xff]  ;;  %v408_v8 = vld [vmem:[%s1511_s16 + $0xe8] sm:$0xff]  ;;  %v391_v13 = vld [vmem:[%s1511_s16 + $0x60] sm:$0xff] }
  0x24   : > { %v545_v61 = vsel %vm507_vm0, %v415_v56, 0  ;;  %v416_v5 = vpack.c.bf16 %v390_v1, %v389_v0  ;;  %v351_v9 = vld [vmem:[%s1869_s4 + $0x28] sm:$0xff]  ;;  %v425_v11 = vpack.c.bf16 %v408_v8, %v407_v7  ;;  %v365_v12 = vld [vmem:[%s1870_s5 + $0x18] sm:$0xff]  ;;  %v352_v15 = vld [vmem:[%s1869_s4 + $0x30] sm:$0xff] }
  0x25   : > { %479 = vperm.xlu0 %1322, %v340_v33   ;;  %v392_v14 = vld [vmem:[%s1511_s16 + $0x68] sm:$0xff]  ;;  %v366_v17 = vld [vmem:[%s1870_s5 + $0x20] sm:$0xff]  ;;  %v409_v18 = vld [vmem:[%s1511_s16 + $0xf0] sm:$0xff] }
  0x26   : > { %484 = vperm.xlu1 %1323, %v341_v35   ;;  %v548_v10 = vsel %vm507_vm0, %v416_v5, 0  ;;  %v417_v16 = vpack.c.bf16 %v392_v14, %v391_v13  ;;  %v410_v19 = vld [vmem:[%s1511_s16 + $0xf8] sm:$0xff]  ;;  %v367_v23 = vld [vmem:[%s1870_s5 + $0x28] sm:$0xff]  ;;  %v393_v24 = vld [vmem:[%s1511_s16 + $0x70] sm:$0xff] }
  0x27   : > { %v353_v20 = vld [vmem:[%s1869_s4 + $0x38] sm:$0xff]  ;;  %v426_v22 = vpack.c.bf16 %v410_v19, %v409_v18  ;;  %v354_v26 = vld [vmem:[%s1869_s4 + $0x40] sm:$0xff]  ;;  %v356_v32 = vld [vmem:[%s1869_s4 + $0x50] sm:$0xff] }
  0x28   : > { %1244 = vmatpush3.bf16.xpose.msra.mxu0 %v536_v28  ;;  %v551_v21 = vsel %vm507_vm0, %v417_v16, 0  ;;  %v394_v25 = vld [vmem:[%s1511_s16 + $0x78] sm:$0xff]  ;;  %v368_v28 = vld [vmem:[%s1870_s5 + $0x30] sm:$0xff]  ;;  %v370_v35 = vld [vmem:[%s1870_s5 + $0x40] sm:$0xff]  ;;  %s378_s16 = sld [smem:[#allocation2]] }
  0x29   : > { %1275 = vmatprep.subr.msk.bf16.mxu0 %vm507_vm0, %v421_v29  ;;  %489 = vperm.xlu0 %1322, %v342_v38   ;;  %v418_v27 = vpack.c.bf16 %v394_v25, %v393_v24  ;;  %v355_v29 = vld [vmem:[%s1869_s4 + $0x48] sm:$0xff]  ;;  %v369_v31 = vld [vmem:[%s1870_s5 + $0x38] sm:$0xff]  ;;  %v284_v33 = vld [vmem:[%s1866_s1 + $0x10] sm:$0xff] }
  0x2a   : > { %494 = vperm.xlu1 %1323, %v343_v41   ;;  %v285_v34 = vld [vmem:[%s1866_s1 + $0x18] sm:$0xff]  ;;  %v371_v38 = vld [vmem:[%s1870_s5 + $0x48] sm:$0xff]  ;;  %v360_v45 = vld [vmem:[%s1869_s4 + $0x70] sm:$0xff] }
  0x2b   : > { %v554_v30 = vsel %vm507_vm0, %v418_v27, 0  ;;  %v299_v36 = vpack.c.bf16 %v285_v34, %v284_v33  ;;  %v357_v37 = vld [vmem:[%s1869_s4 + $0x58] sm:$0xff]  ;;  %v287_v41 = vld [vmem:[%s1866_s1 + $0x28] sm:$0xff]  ;;  %v374_v48 = vld [vmem:[%s1870_s5 + $0x60] sm:$0xff] }
  0x2c   : > { %v359_v43 = vld [vmem:[%s1869_s4 + $0x68] sm:$0xff]  ;;  %v289_v47 = vld [vmem:[%s1866_s1 + $0x38] sm:$0xff]  ;;  %v290_v53 = vld [vmem:[%s1866_s1 + $0x40] sm:$0xff] }
  0x2d   : > { %499 = vperm.xlu0 %1322, %v344_v44   ;;  %v373_v44 = vld [vmem:[%s1870_s5 + $0x58] sm:$0xff]  ;;  %v291_v54 = vld [vmem:[%s1866_s1 + $0x48] sm:$0xff] }
  0x2e   : > { %504 = vperm.xlu1 %1323, %v345_v46   ;;  %v288_v46 = vld [vmem:[%s1866_s1 + $0x30] sm:$0xff]  ;;  %v302_v56 = vpack.c.bf16 %v291_v54, %v290_v53  ;;  %v293_v58 = vld [vmem:[%s1866_s1 + $0x58] sm:$0xff] }
  0x2f   : > { %v297_v0 = vld [vmem:[%s1866_s1 + $0x78] sm:$0xff] }
  0x30   : > { %1246 = vmatpush3.bf16.xpose.msra.mxu0 %v539_v39  ;;  %v358_v39 = vld [vmem:[%s1869_s4 + $0x60] sm:$0xff] }
  0x31   : > { %1276 = vmatprep.subr.msk.bf16.mxu0 %vm507_vm0, %v422_v40  ;;  %743 = vperm.xlu0 %1322, %v346_v49   ;;  %v286_v40 = vld [vmem:[%s1866_s1 + $0x20] sm:$0xff]  ;;  %v301_v49 = vpack.c.bf16 %v289_v47, %v288_v46 }
  0x32   : > { %748 = vperm.xlu1 %1323, %v347_v52   ;;  %v300_v42 = vpack.c.bf16 %v287_v41, %v286_v40  ;;  %v376_v52 = vld [vmem:[%s1870_s5 + $0x70] sm:$0xff] }
  0x35   : > { %753 = vperm.xlu0 %1322, %v348_v55   ;;  %v377_v55 = vld [vmem:[%s1870_s5 + $0x78] sm:$0xff] }
  0x36   : > { %758 = vperm.xlu1 %1323, %v349_v57   ;;  %v292_v57 = vld [vmem:[%s1866_s1 + $0x50] sm:$0xff] }
  0x37   : > { %v303_v59 = vpack.c.bf16 %v293_v58, %v292_v57 }
  0x38   : > { %1248 = vmatpush3.bf16.xpose.msra.mxu0 %v542_v50  ;;  %v361_v50 = vld [vmem:[%s1869_s4 + $0x78] sm:$0xff] }
  0x39   : > { %1277 = vmatprep.subr.msk.bf16.mxu0 %vm507_vm0, %v423_v51  ;;  %968 = vperm.xlu0 %1322, %v362_v60   ;;  %v375_v51 = vld [vmem:[%s1870_s5 + $0x68] sm:$0xff]  ;;  %v294_v60 = vld [vmem:[%s1866_s1 + $0x60] sm:$0xff] }
  0x3a   : > { %973 = vperm.xlu1 %1323, %v363_v63   ;;  %v296_v63 = vld [vmem:[%s1866_s1 + $0x70] sm:$0xff] }
  0x3b   : > { %v305_v1 = vpack.c.bf16 %v297_v0, %v296_v63 }
  0x3d   : > { %763 = vperm.xlu0 %1322, %v350_v4  }
  0x3e   : > { %978 = vperm.xlu1 %1323, %v364_v6  }
  0x40   : > { %1250 = vmatpush3.bf16.xpose.msra.mxu0 %v545_v61  ;;  %v295_v61 = vld [vmem:[%s1866_s1 + $0x68] sm:$0xff] }
  0x41   : > { %1278 = vmatprep.subr.msk.bf16.mxu0 %vm507_vm0, %v424_v62  ;;  %768 = vperm.xlu0 %1322, %v351_v9   ;;  %v304_v62 = vpack.c.bf16 %v295_v61, %v294_v60 }
  0x42   : > { %983 = vperm.xlu1 %1323, %v365_v12  }
  0x45   : > { %773 = vperm.xlu0 %1322, %v352_v15  }
  0x46   : > { %988 = vperm.xlu1 %1323, %v366_v17  }
  0x48   : > { %1252 = vmatpush3.bf16.xpose.msra.mxu0 %v548_v10 }
  0x49   : > { %1279 = vmatprep.subr.msk.bf16.mxu0 %vm507_vm0, %v425_v11  ;;  %778 = vperm.xlu0 %1322, %v353_v20  }
  0x4a   : > { %993 = vperm.xlu1 %1323, %v367_v23  }
  0x4d   : > { %783 = vperm.xlu0 %1322, %v354_v26  }
  0x4e   : > { %998 = vperm.xlu1 %1323, %v368_v28  }
  0x50   : > { %1254 = vmatpush3.bf16.xpose.msra.mxu0 %v551_v21 }
  0x51   : > { %1280 = vmatprep.subr.msk.bf16.mxu0 %vm507_vm0, %v426_v22  ;;  %788 = vperm.xlu0 %1322, %v355_v29  }
  0x52   : > { %1003 = vperm.xlu1 %1323, %v369_v31  }
  0x55   : > { %793 = vperm.xlu0 %1322, %v356_v32  }
  0x56   : > { %1008 = vperm.xlu1 %1323, %v370_v35  }
  0x58   : > { %1256 = vmatpush3.bf16.xpose.msra.mxu0 %v554_v30 }
  0x59   : > { %798 = vperm.xlu0 %1322, %v357_v37  }
  0x5a   : > { %1013 = vperm.xlu1 %1323, %v371_v38  }
  0x5d   : > { %803 = vperm.xlu0 %1322, %v358_v39  }
  0x5f   : > { %1258 = vmatmul.mubr.msk.bf16.vlgmr.msra.gmra.mrb[0].mxu0 %vm507_vm0, %v1488_v2  ;;  %v372_v2 = vld [vmem:[%s1870_s5 + $0x50] sm:$0xff] }
  0x60   : > { %1259 = vmatprep.mubr.msk.bf16.mxu0 %vm507_vm0, %v299_v36  ;;  %1018 = vperm.xlu1 %1323, %v372_v2  }
  0x61   : > { %808 = vperm.xlu0 %1322, %v359_v43  }
  0x64   : > { %1023 = vperm.xlu1 %1323, %v373_v44  }
  0x65   : > { %813 = vperm.xlu0 %1322, %v360_v45  }
  0x67   : > { %1260 = vmatmul.mubr.msk.bf16.gmra.mrb[4].mxu0 %vm507_vm0, %v299_v36 }
  0x68   : > { %1261 = vmatprep.mubr.msk.bf16.mxu0 %vm507_vm0, %v300_v42  ;;  %1028 = vperm.xlu1 %1323, %v374_v48  }
  0x69   : > { %818 = vperm.xlu0 %1322, %v361_v50  }
  0x6c   : > { %1033 = vperm.xlu1 %1323, %v375_v51  }
  0x6d   : > { %1038 = vperm.xlu0 %1322, %v376_v52  }
  0x6f   : > { %1262 = vmatmul.mubr.msk.bf16.gmra.mrb[8].mxu0 %vm507_vm0, %v300_v42 }
  0x70   : > { %1263 = vmatprep.mubr.msk.bf16.mxu0 %vm507_vm0, %v301_v49  ;;  %1043 = vperm.xlu1 %1323, %v377_v55  }
  0x77   : > { %1264 = vmatmul.mubr.msk.bf16.gmra.mrb[12].mxu0 %vm507_vm0, %v301_v49 }
  0x78   : > { %1265 = vmatprep.mubr.msk.bf16.mxu0 %vm507_vm0, %v302_v56 }
  0x7f   : > { %1266 = vmatmul.mubr.msk.bf16.gmra.mrb[16].mxu0 %vm507_vm0, %v302_v56 }
  0x80   : > { %1267 = vmatprep.mubr.msk.bf16.mxu0 %vm507_vm0, %v303_v59 }
  0x87   : > { %1268 = vmatmul.mubr.msk.bf16.gmra.mrb[20].mxu0 %vm507_vm0, %v303_v59 }
  0x88   : > { %1269 = vmatprep.mubr.msk.bf16.mxu0 %vm507_vm0, %v304_v62 }
  0x8f   : > { %1270 = vmatmul.mubr.msk.bf16.gmra.mrb[24].mxu0 %vm507_vm0, %v304_v62 }
  0x90   : > { %1271 = vmatprep.mubr.msk.bf16.mxu0 %vm507_vm0, %v305_v1  ;;  %v430_v4 = vpop.permute.xlu0 %429 }
  0x91   : > { %v440_v13 = vpop.permute.xlu1 %439 }
  0x94   : > { %v435_v8 = vpop.permute.xlu0 %434 }
  0x95   : > { %v445_v24 = vpop.permute.xlu1 %444 }
  0x97   : > { %1272 = vmatmul.mubr.msk.bf16.gmra.mrb[28].mxu0 %vm507_vm0, %v305_v1 }
  0x98   : > { %v450_v35 = vpop.permute.xlu0 %449 }
  0x99   : > { %v455_v40 = vpop.permute.xlu1 %454 }
  0x9c   : > { %v460_v50 = vpop.permute.xlu0 %459 }
  0x9d   : > { %v465_v55 = vpop.permute.xlu1 %464 }
 0x132   : > { %v614_v5 = vpop.f32.mrb[0].mxu0 }
 0x133   : > { %v615_v6 = vadd.f32 %v614_v5, %v430_v4  ;;  %v616_v7 = vpop.f32.mrb[1].mxu0 }
 0x134   : > { %v617_v9 = vadd.f32 %v616_v7, %v430_v4  ;;  %v618_v10 = vpop.f32.mrb[2].mxu0  ;;  %v470_v4 = vpop.permute.xlu0 %469 }
 0x135   : > { %v619_v11 = vadd.f32 %v618_v10, %v435_v8  ;;  %v620_v12 = vpop.f32.mrb[3].mxu0  ;;  %v693_v15 = vmax.f32 %v615_v6, 0.0 }
 0x136   : > { %v621_v14 = vadd.f32 %v620_v12, %v435_v8  ;;  %v694_v17 = vmax.f32 %v617_v9, 0.0  ;;  %v475_v9 = vpop.permute.xlu1 %474 }
 0x137   : > { %v695_v16 = vmax.f32 %v619_v11, 0.0 }
 0x138   : > { %v696_v18 = vmax.f32 %v621_v14, 0.0 }
 0x139   : > { %v725_v19 = vpack.c.bf16 %v695_v16, %v693_v15 }
 0x13a   : > { %v624_v20 = vpop.f32.mrb[4].mxu0  ;;  %v726_v21 = vpack.c.bf16 %v696_v18, %v694_v17 }
 0x13b   : > { %v625_v22 = vadd.f32 %v624_v20, %v440_v13  ;;  %v626_v23 = vpop.f32.mrb[5].mxu0  ;;  %v480_v20 = vpop.permute.xlu0 %479 }
 0x13c   : > { %v627_v25 = vadd.f32 %v626_v23, %v440_v13  ;;  %v628_v26 = vpop.f32.mrb[6].mxu0  ;;  %821 = vmatprep.subr.bf16.mxu1 %v726_v21 }
 0x13d   : > { %v629_v27 = vadd.f32 %v628_v26, %v445_v24  ;;  %v630_v28 = vpop.f32.mrb[7].mxu0  ;;  %822 = vmatpush1.bf16.msra.mxu1 %v725_v19  ;;  %v697_v30 = vmax.f32 %v625_v22, 0.0 }
 0x13e   : > { %v631_v29 = vadd.f32 %v630_v28, %v445_v24  ;;  %v698_v32 = vmax.f32 %v627_v25, 0.0  ;;  %v485_v25 = vpop.permute.xlu1 %484 }
 0x13f   : > { %v699_v31 = vmax.f32 %v629_v27, 0.0 }
 0x140   : > { %v700_v33 = vmax.f32 %v631_v29, 0.0 }
 0x141   : > { %v727_v34 = vpack.c.bf16 %v699_v31, %v697_v30 }
 0x142   : > { %v728_v36 = vpack.c.bf16 %v700_v33, %v698_v32  ;;  %v634_v37 = vpop.f32.mrb[8].mxu0 }
 0x143   : > { %v635_v38 = vadd.f32 %v634_v37, %v450_v35  ;;  %v636_v39 = vpop.f32.mrb[9].mxu0 }
 0x144   : > { %v637_v41 = vadd.f32 %v636_v39, %v450_v35  ;;  %v638_v2 = vpop.f32.mrb[10].mxu0  ;;  %823 = vmatprep.subr.bf16.mxu1 %v728_v36  ;;  %v490_v36 = vpop.permute.xlu0 %489 }
 0x145   : > { %v639_v42 = vadd.f32 %v638_v2, %v455_v40  ;;  %v640_v43 = vpop.f32.mrb[11].mxu0  ;;  %824 = vmatpush1.bf16.msra.mxu1 %v727_v34  ;;  %v701_v45 = vmax.f32 %v635_v38, 0.0 }
 0x146   : > { %v641_v44 = vadd.f32 %v640_v43, %v455_v40  ;;  %v702_v47 = vmax.f32 %v637_v41, 0.0  ;;  %v495_v41 = vpop.permute.xlu1 %494 }
 0x147   : > { %v703_v46 = vmax.f32 %v639_v42, 0.0 }
 0x148   : > { %v704_v48 = vmax.f32 %v641_v44, 0.0 }
 0x149   : > { %v729_v49 = vpack.c.bf16 %v703_v46, %v701_v45 }
 0x14a   : > { %v730_v51 = vpack.c.bf16 %v704_v48, %v702_v47  ;;  %v644_v52 = vpop.f32.mrb[12].mxu0 }
 0x14b   : > { %v645_v53 = vadd.f32 %v644_v52, %v460_v50  ;;  %v646_v54 = vpop.f32.mrb[13].mxu0 }
 0x14c   : > { %v647_v56 = vadd.f32 %v646_v54, %v460_v50  ;;  %v648_v57 = vpop.f32.mrb[14].mxu0  ;;  %825 = vmatprep.subr.bf16.mxu1 %v730_v51  ;;  %v500_v51 = vpop.permute.xlu0 %499 }
 0x14d   : > { %v649_v58 = vadd.f32 %v648_v57, %v465_v55  ;;  %v650_v59 = vpop.f32.mrb[15].mxu0  ;;  %826 = vmatpush1.bf16.msra.mxu1 %v729_v49  ;;  %v705_v61 = vmax.f32 %v645_v53, 0.0 }
 0x14e   : > { %v651_v60 = vadd.f32 %v650_v59, %v465_v55  ;;  %v706_v63 = vmax.f32 %v647_v56, 0.0  ;;  %v505_v56 = vpop.permute.xlu1 %504 }
 0x14f   : > { %v707_v62 = vmax.f32 %v649_v58, 0.0 }
 0x150   : > { %v708_v0 = vmax.f32 %v651_v60, 0.0 }
 0x151   : > { %v731_v1 = vpack.c.bf16 %v707_v62, %v705_v61 }
 0x152   : > { %v732_v5 = vpack.c.bf16 %v708_v0, %v706_v63  ;;  %v654_v6 = vpop.f32.mrb[16].mxu0 }
 0x153   : > { %v655_v7 = vadd.f32 %v654_v6, %v470_v4  ;;  %v656_v8 = vpop.f32.mrb[17].mxu0  ;;  %v307_v6 = vld [vmem:[%s1868_s3 + $0x8] sm:$0xff] }
 0x154   : > { %v657_v10 = vadd.f32 %v656_v8, %v470_v4  ;;  %v658_v11 = vpop.f32.mrb[18].mxu0  ;;  %827 = vmatprep.subr.bf16.mxu1 %v732_v5  ;;  %v306_v5 = vld [vmem:[%s1868_s3] sm:$0xff] }
 0x155   : > { %v659_v12 = vadd.f32 %v658_v11, %v475_v9  ;;  %v660_v13 = vpop.f32.mrb[19].mxu0  ;;  %828 = vmatpush1.bf16.msra.mxu1 %v731_v1  ;;  %v709_v15 = vmax.f32 %v655_v7, 0.0  ;;  %v322_v8 = vpack.c.bf16 %v307_v6, %v306_v5 }
 0x156   : > { %v661_v14 = vadd.f32 %v660_v13, %v475_v9  ;;  %v710_v17 = vmax.f32 %v657_v10, 0.0  ;;  %v308_v9 = vld [vmem:[%s1868_s3 + $0x10] sm:$0xff]  ;;  %v309_v10 = vld [vmem:[%s1868_s3 + $0x18] sm:$0xff]  ;;  %v311_v13 = vld [vmem:[%s1868_s3 + $0x28] sm:$0xff] }
 0x157   : > { %v711_v16 = vmax.f32 %v659_v12, 0.0  ;;  %v323_v11 = vpack.c.bf16 %v309_v10, %v308_v9  ;;  %v310_v12 = vld [vmem:[%s1868_s3 + $0x20] sm:$0xff] }
 0x158   : > { %v712_v18 = vmax.f32 %v661_v14, 0.0  ;;  %v324_v14 = vpack.c.bf16 %v311_v13, %v310_v12 }
 0x159   : > { %v733_v19 = vpack.c.bf16 %v711_v16, %v709_v15  ;;  %v312_v15 = vld [vmem:[%s1868_s3 + $0x30] sm:$0xff]  ;;  %v313_v16 = vld [vmem:[%s1868_s3 + $0x38] sm:$0xff] }
 0x15a   : > { %v734_v21 = vpack.c.bf16 %v712_v18, %v710_v17  ;;  %v664_v22 = vpop.f32.mrb[20].mxu0  ;;  %v325_v17 = vpack.c.bf16 %v313_v16, %v312_v15  ;;  %v314_v18 = vld [vmem:[%s1868_s3 + $0x40] sm:$0xff] }
 0x15b   : > { %v665_v23 = vadd.f32 %v664_v22, %v480_v20  ;;  %v666_v24 = vpop.f32.mrb[21].mxu0  ;;  %v317_v22 = vld [vmem:[%s1868_s3 + $0x58] sm:$0xff] }
 0x15c   : > { %v667_v26 = vadd.f32 %v666_v24, %v480_v20  ;;  %v668_v27 = vpop.f32.mrb[22].mxu0  ;;  %829 = vmatprep.subr.bf16.mxu1 %v734_v21  ;;  %v316_v21 = vld [vmem:[%s1868_s3 + $0x50] sm:$0xff]  ;;  %v318_v24 = vld [vmem:[%s1868_s3 + $0x60] sm:$0xff] }
 0x15d   : > { %v669_v28 = vadd.f32 %v668_v27, %v485_v25  ;;  %v670_v29 = vpop.f32.mrb[23].mxu0  ;;  %830 = vmatpush1.bf16.msra.mxu1 %v733_v19  ;;  %v713_v31 = vmax.f32 %v665_v23, 0.0  ;;  %v315_v19 = vld [vmem:[%s1868_s3 + $0x48] sm:$0xff]  ;;  %v327_v23 = vpack.c.bf16 %v317_v22, %v316_v21  ;;  %v320_v27 = vld [vmem:[%s1868_s3 + $0x70] sm:$0xff] }
 0x15e   : > { %v671_v30 = vadd.f32 %v670_v29, %v485_v25  ;;  %v714_v33 = vmax.f32 %v667_v26, 0.0  ;;  %v326_v20 = vpack.c.bf16 %v315_v19, %v314_v18  ;;  %v319_v25 = vld [vmem:[%s1868_s3 + $0x68] sm:$0xff] }
 0x15f   : > { %v715_v32 = vmax.f32 %v669_v28, 0.0  ;;  %v328_v26 = vpack.c.bf16 %v319_v25, %v318_v24  ;;  %v321_v28 = vld [vmem:[%s1868_s3 + $0x78] sm:$0xff] }
 0x160   : > { %v716_v34 = vmax.f32 %v671_v30, 0.0  ;;  %v329_v29 = vpack.c.bf16 %v321_v28, %v320_v27  ;;  %v744_v30 = vpop.permute.xlu0 %743 }
 0x161   : > { %v735_v35 = vpack.c.bf16 %v715_v32, %v713_v31  ;;  %v749_v31 = vpop.permute.xlu1 %748 }
 0x162   : > { %v736_v37 = vpack.c.bf16 %v716_v34, %v714_v33  ;;  %v674_v38 = vpop.f32.mrb[24].mxu0 }
 0x163   : > { %v675_v39 = vadd.f32 %v674_v38, %v490_v36  ;;  %v676_v40 = vpop.f32.mrb[25].mxu0 }
 0x164   : > { %v677_v2 = vadd.f32 %v676_v40, %v490_v36  ;;  %v678_v42 = vpop.f32.mrb[26].mxu0  ;;  %831 = vmatprep.subr.bf16.mxu1 %v736_v37  ;;  %v754_v32 = vpop.permute.xlu0 %753 }
 0x165   : > { %v679_v43 = vadd.f32 %v678_v42, %v495_v41  ;;  %v680_v44 = vpop.f32.mrb[27].mxu0  ;;  %832 = vmatpush1.bf16.msra.mxu1 %v735_v35  ;;  %v717_v46 = vmax.f32 %v675_v39, 0.0  ;;  %v759_v33 = vpop.permute.xlu1 %758 }
 0x166   : > { %v681_v45 = vadd.f32 %v680_v44, %v495_v41  ;;  %v718_v48 = vmax.f32 %v677_v2, 0.0 }
 0x167   : > { %v719_v47 = vmax.f32 %v679_v43, 0.0 }
 0x168   : > { %v720_v49 = vmax.f32 %v681_v45, 0.0  ;;  %v969_v34 = vpop.permute.xlu0 %968 }
 0x169   : > { %v737_v50 = vpack.c.bf16 %v719_v47, %v717_v46  ;;  %v974_v35 = vpop.permute.xlu1 %973 }
 0x16a   : > { %v738_v52 = vpack.c.bf16 %v720_v49, %v718_v48  ;;  %v684_v53 = vpop.f32.mrb[28].mxu0 }
 0x16b   : > { %v685_v54 = vadd.f32 %v684_v53, %v500_v51  ;;  %v686_v55 = vpop.f32.mrb[29].mxu0 }
 0x16c   : > { %v687_v57 = vadd.f32 %v686_v55, %v500_v51  ;;  %v688_v58 = vpop.f32.mrb[30].mxu0  ;;  %833 = vmatprep.subr.bf16.mxu1 %v738_v52  ;;  %v764_v36 = vpop.permute.xlu0 %763 }
 0x16d   : > { %v689_v59 = vadd.f32 %v688_v58, %v505_v56  ;;  %v690_v60 = vpop.f32.mrb[31].mxu0  ;;  %834 = vmatpush1.bf16.msra.mxu1 %v737_v50  ;;  %v721_v62 = vmax.f32 %v685_v54, 0.0  ;;  %v979_v37 = vpop.permute.xlu1 %978 }
 0x16e   : > { %v691_v61 = vadd.f32 %v690_v60, %v505_v56  ;;  %v722_v0 = vmax.f32 %v687_v57, 0.0 }
 0x16f   : > { %v723_v63 = vmax.f32 %v689_v59, 0.0 }
 0x170   : > { %v724_v1 = vmax.f32 %v691_v61, 0.0  ;;  %v769_v38 = vpop.permute.xlu0 %768 }
 0x171   : > { %v739_v4 = vpack.c.bf16 %v723_v63, %v721_v62 }
 0x172   : > { %v740_v7 = vpack.c.bf16 %v724_v1, %v722_v0 }
 0x174   : > { %835 = vmatprep.subr.bf16.mxu1 %v740_v7  ;;  %v1806_v39 = vpop.permute.xlu0 %773 }
 0x175   : > { %836 = vmatpush1.bf16.msra.mxu1 %v739_v4 }
 0x178   : > { %854 = vmatmul.mubr.bf16.vlgmr.msra.gmra.mrb[0].mxu1 %v322_v8  ;;  %v1808_v50 = vpop.permute.xlu0 %778 }
 0x179   : > { %863 = vmatprep.mubr.bf16.mxu1 %v1388_v3 }
 0x17c   : > { %v1810_v1 = vpop.permute.xlu0 %783 }
 0x180   : > { %864 = vmatmul.mubr.bf16.gmra.mrb[4].mxu1 %v323_v11  ;;  %v789_v19 = vpop.permute.xlu0 %788 }
 0x181   : > { %873 = vmatprep.mubr.bf16.mxu1 %v1388_v3 }
 0x188   : > { %874 = vmatmul.mubr.bf16.gmra.mrb[8].mxu1 %v324_v14 }
 0x189   : > { %883 = vmatprep.mubr.bf16.mxu1 %v1388_v3 }
 0x190   : > { %884 = vmatmul.mubr.bf16.gmra.mrb[12].mxu1 %v325_v17 }
 0x191   : > { %893 = vmatprep.mubr.bf16.mxu1 %v1388_v3 }
 0x198   : > { %894 = vmatmul.mubr.bf16.gmra.mrb[16].mxu1 %v326_v20 }
 0x199   : > { %903 = vmatprep.mubr.bf16.mxu1 %v1388_v3 }
 0x1a0   : > { %904 = vmatmul.mubr.bf16.gmra.mrb[20].mxu1 %v327_v23 }
 0x1a1   : > { %913 = vmatprep.mubr.bf16.mxu1 %v1388_v3 }
 0x1a8   : > { %914 = vmatmul.mubr.bf16.gmra.mrb[24].mxu1 %v328_v26 }
 0x1a9   : > { %923 = vmatprep.mubr.bf16.mxu1 %v1388_v3  ;;  %v984_v3 = vpop.permute.xlu1 %983 }
 0x1ad   : > { %v989_v40 = vpop.permute.xlu1 %988 }
 0x1b0   : > { %924 = vmatmul.mubr.bf16.gmra.mrb[28].mxu1 %v329_v29 }
 0x1b1   : > { %v994_v52 = vpop.permute.xlu1 %993 }
 0x1b5   : > { %v999_v7 = vpop.permute.xlu1 %998 }
 0x1b9   : > { %v1004_v23 = vpop.permute.xlu1 %1003 }
 0x24b   : > { %v855_v41 = vpop.f32.mrb[0].mxu1 }
 0x24c   : > { %v856_v2 = vadd.f32 %v855_v41, %v744_v30  ;;  %v857_v42 = vpop.f32.mrb[1].mxu1 }
 0x24d   : > { %v858_v43 = vadd.f32 %v857_v42, %v744_v30  ;;  %v859_v44 = vpop.f32.mrb[2].mxu1 }
 0x24e   : > { %v934_v45 = vmax.f32 %v856_v2, 0.0  ;;  %v860_v46 = vadd.f32 %v859_v44, %v749_v31  ;;  %v861_v47 = vpop.f32.mrb[3].mxu1  ;;  %v1009_v2 = vpop.permute.xlu1 %1008 }
 0x24f   : > { %v935_v48 = vmax.f32 %v858_v43, 0.0  ;;  %v862_v49 = vadd.f32 %v861_v47, %v749_v31 }
 0x250   : > { %v936_v51 = vmax.f32 %v860_v46, 0.0  ;;  %v1046_v54 = vmul.f32 %v969_v34, %v934_v45 }
 0x251   : > { %v937_v53 = vmax.f32 %v862_v49, 0.0  ;;  %v1047_v56 = vmul.f32 %v969_v34, %v935_v48 }
 0x252   : > { %v1048_v55 = vmul.f32 %v974_v35, %v936_v51 }
 0x253   : > { %v1049_v57 = vmul.f32 %v974_v35, %v937_v53  ;;  %v865_v58 = vpop.f32.mrb[4].mxu1 }
 0x254   : > { %v1078_v59 = vadd.f32 %v1048_v55, %v1046_v54  ;;  %v866_v60 = vadd.f32 %v865_v58, %v754_v32  ;;  %v867_v61 = vpop.f32.mrb[5].mxu1 }
 0x255   : > { %v1099_v62 = vadd.f32 %v1049_v57, %v1047_v56  ;;  %v868_v63 = vadd.f32 %v867_v61, %v754_v32  ;;  %v869_v0 = vpop.f32.mrb[6].mxu1 }
 0x256   : > { %v938_v4 = vmax.f32 %v866_v60, 0.0  ;;  %v870_v5 = vadd.f32 %v869_v0, %v759_v33  ;;  %v871_v6 = vpop.f32.mrb[7].mxu1 }
 0x257   : > { %v939_v8 = vmax.f32 %v868_v63, 0.0  ;;  %v872_v9 = vadd.f32 %v871_v6, %v759_v33 }
 0x258   : > { %v1050_v10 = vmul.f32 %v979_v37, %v938_v4  ;;  %v940_v11 = vmax.f32 %v870_v5, 0.0 }
 0x259   : > { %v1051_v12 = vmul.f32 %v979_v37, %v939_v8  ;;  %v941_v13 = vmax.f32 %v872_v9, 0.0  ;;  %v794_v37 = vpop.permute.xlu0 %793 }
 0x25a   : > { %v1079_v14 = vadd.f32 %v1078_v59, %v1050_v10  ;;  %v1052_v15 = vmul.f32 %v984_v3, %v940_v11 }
 0x25b   : > { %v1100_v16 = vadd.f32 %v1099_v62, %v1051_v12  ;;  %v1053_v17 = vmul.f32 %v984_v3, %v941_v13  ;;  %v875_v18 = vpop.f32.mrb[8].mxu1 }
 0x25c   : > { %v1080_v20 = vadd.f32 %v1079_v14, %v1052_v15  ;;  %v876_v21 = vadd.f32 %v875_v18, %v764_v36  ;;  %v877_v22 = vpop.f32.mrb[9].mxu1 }
 0x25d   : > { %v1101_v24 = vadd.f32 %v1100_v16, %v1053_v17  ;;  %v878_v25 = vadd.f32 %v877_v22, %v764_v36  ;;  %v879_v26 = vpop.f32.mrb[10].mxu1  ;;  %v799_v55 = vpop.permute.xlu0 %798 }
 0x25e   : > { %v942_v27 = vmax.f32 %v876_v21, 0.0  ;;  %v880_v28 = vadd.f32 %v879_v26, %v769_v38  ;;  %v881_v29 = vpop.f32.mrb[11].mxu1 }
 0x25f   : > { %v943_v30 = vmax.f32 %v878_v25, 0.0  ;;  %v882_v31 = vadd.f32 %v881_v29, %v769_v38 }
 0x260   : > { %v1054_v32 = vmul.f32 %v989_v40, %v942_v27  ;;  %v944_v33 = vmax.f32 %v880_v28, 0.0 }
 0x261   : > { %v1055_v34 = vmul.f32 %v989_v40, %v943_v30  ;;  %v945_v35 = vmax.f32 %v882_v31, 0.0 }
 0x262   : > { %v1081_v3 = vadd.f32 %v1080_v20, %v1054_v32  ;;  %v1056_v41 = vmul.f32 %v994_v52, %v944_v33 }
 0x263   : > { %v1102_v42 = vadd.f32 %v1101_v24, %v1055_v34  ;;  %v1057_v43 = vmul.f32 %v994_v52, %v945_v35  ;;  %v885_v44 = vpop.f32.mrb[12].mxu1  ;;  %v1014_v52 = vpop.permute.xlu1 %1013 }
 0x264   : > { %v1082_v45 = vadd.f32 %v1081_v3, %v1056_v41  ;;  %v886_v36 = vadd.f32 %v885_v44, %v1806_v39  ;;  %v887_v46 = vpop.f32.mrb[13].mxu1 }
 0x265   : > { %v1103_v47 = vadd.f32 %v1102_v42, %v1057_v43  ;;  %v888_v48 = vadd.f32 %v887_v46, %v1806_v39  ;;  %v889_v49 = vpop.f32.mrb[14].mxu1 }
 0x266   : > { %v946_v38 = vmax.f32 %v886_v36, 0.0  ;;  %v890_v51 = vadd.f32 %v889_v49, %v1808_v50  ;;  %v891_v40 = vpop.f32.mrb[15].mxu1 }
 0x267   : > { %v947_v53 = vmax.f32 %v888_v48, 0.0  ;;  %v892_v54 = vadd.f32 %v891_v40, %v1808_v50  ;;  %v804_v50 = vpop.permute.xlu0 %803  ;;  %v1019_v13 = vpop.permute.xlu1 %1018 }
 0x268   : > { %v1058_v56 = vmul.f32 %v999_v7, %v946_v38  ;;  %v948_v57 = vmax.f32 %v890_v51, 0.0 }
 0x269   : > { %v1059_v58 = vmul.f32 %v999_v7, %v947_v53  ;;  %v949_v59 = vmax.f32 %v892_v54, 0.0 }
 0x26a   : > { %v1083_v60 = vadd.f32 %v1082_v45, %v1058_v56  ;;  %v1060_v61 = vmul.f32 %v1004_v23, %v948_v57 }
 0x26b   : > { %v1104_v62 = vadd.f32 %v1103_v47, %v1059_v58  ;;  %v1061_v63 = vmul.f32 %v1004_v23, %v949_v59  ;;  %v895_v0 = vpop.f32.mrb[16].mxu1  ;;  %v809_v25 = vpop.permute.xlu0 %808 }
 0x26c   : > { %v1084_v39 = vadd.f32 %v1083_v60, %v1060_v61  ;;  %v896_v4 = vadd.f32 %v895_v0, %v1810_v1  ;;  %v897_v5 = vpop.f32.mrb[17].mxu1  ;;  %v1024_v28 = vpop.permute.xlu1 %1023 }
 0x26d   : > { %v1105_v6 = vadd.f32 %v1104_v62, %v1061_v63  ;;  %v898_v8 = vadd.f32 %v897_v5, %v1810_v1  ;;  %v899_v9 = vpop.f32.mrb[18].mxu1 }
 0x26e   : > { %v950_v10 = vmax.f32 %v896_v4, 0.0  ;;  %v900_v11 = vadd.f32 %v899_v9, %v789_v19  ;;  %v901_v12 = vpop.f32.mrb[19].mxu1 }
 0x26f   : > { %v951_v7 = vmax.f32 %v898_v8, 0.0  ;;  %v902_v14 = vadd.f32 %v901_v12, %v789_v19  ;;  %v814_v43 = vpop.permute.xlu0 %813 }
 0x270   : > { %v1062_v15 = vmul.f32 %v1009_v2, %v950_v10  ;;  %v952_v16 = vmax.f32 %v900_v11, 0.0  ;;  %v1029_v36 = vpop.permute.xlu1 %1028 }
 0x271   : > { %v1063_v17 = vmul.f32 %v1009_v2, %v951_v7  ;;  %v953_v18 = vmax.f32 %v902_v14, 0.0 }
 0x272   : > { %v1085_v20 = vadd.f32 %v1084_v39, %v1062_v15  ;;  %v1064_v21 = vmul.f32 %v1014_v52, %v952_v16 }
 0x273   : > { %v1106_v22 = vadd.f32 %v1105_v6, %v1063_v17  ;;  %v1065_v23 = vmul.f32 %v1014_v52, %v953_v18  ;;  %v905_v24 = vpop.f32.mrb[20].mxu1  ;;  %v819_v60 = vpop.permute.xlu0 %818 }
 0x274   : > { %v1086_v26 = vadd.f32 %v1085_v20, %v1064_v21  ;;  %v906_v1 = vadd.f32 %v905_v24, %v794_v37  ;;  %v907_v27 = vpop.f32.mrb[21].mxu1  ;;  %v1034_v61 = vpop.permute.xlu1 %1033 }
 0x275   : > { %v1107_v29 = vadd.f32 %v1106_v22, %v1065_v23  ;;  %v908_v30 = vadd.f32 %v907_v27, %v794_v37  ;;  %v909_v31 = vpop.f32.mrb[22].mxu1 }
 0x276   : > { %v954_v32 = vmax.f32 %v906_v1, 0.0  ;;  %v910_v33 = vadd.f32 %v909_v31, %v799_v55  ;;  %v911_v19 = vpop.f32.mrb[23].mxu1 }
 0x277   : > { %v955_v34 = vmax.f32 %v908_v30, 0.0  ;;  %v912_v35 = vadd.f32 %v911_v19, %v799_v55  ;;  %v1039_v15 = vpop.permute.xlu0 %1038 }
 0x278   : > { %v1066_v3 = vmul.f32 %v1019_v13, %v954_v32  ;;  %v956_v41 = vmax.f32 %v910_v33, 0.0  ;;  %v1044_v21 = vpop.permute.xlu1 %1043 }
 0x279   : > { %v1067_v2 = vmul.f32 %v1019_v13, %v955_v34  ;;  %v957_v42 = vmax.f32 %v912_v35, 0.0  ;;  %v1389_v34 = vmov 1966171168  }
 0x27a   : > { %v1087_v44 = vadd.f32 %v1086_v26, %v1066_v3  ;;  %v1068_v45 = vmul.f32 %v1024_v28, %v956_v41  ;;  %v1127_v35 = vunpack.c.l.s4 %v1389_v34  ;;  %v1129_v3 = vlaneseq }
 0x27b   : > { %v1108_v46 = vadd.f32 %v1107_v29, %v1067_v2  ;;  %v1069_v47 = vmul.f32 %v1024_v28, %v957_v42  ;;  %v915_v48 = vpop.f32.mrb[24].mxu1 }
 0x27c   : > { %v1088_v49 = vadd.f32 %v1087_v44, %v1068_v45  ;;  %v916_v38 = vadd.f32 %v915_v48, %v804_v50  ;;  %v917_v37 = vpop.f32.mrb[25].mxu1  ;;  %v1128_v45 = vunpack.c.0.s8 %v1127_v35  ;;  %vm1143_vm1 = vcmp.lt.s32.totalorder %v1129_v3, 256 }
 0x27d   : > { %v1109_v51 = vadd.f32 %v1108_v46, %v1069_v47  ;;  %v918_v40 = vadd.f32 %v917_v37, %v804_v50  ;;  %v919_v53 = vpop.f32.mrb[26].mxu1 }
 0x27e   : > { %v958_v54 = vmax.f32 %v916_v38, 0.0  ;;  %v920_v56 = vadd.f32 %v919_v53, %v809_v25  ;;  %v921_v55 = vpop.f32.mrb[27].mxu1 }
 0x27f   : > { %v959_v57 = vmax.f32 %v918_v40, 0.0  ;;  %v922_v52 = vadd.f32 %v921_v55, %v809_v25 }
 0x280   : > { %v1070_v58 = vmul.f32 %v1029_v36, %v958_v54  ;;  %v960_v59 = vmax.f32 %v920_v56, 0.0 }
 0x281   : > { %v1071_v62 = vmul.f32 %v1029_v36, %v959_v57  ;;  %v961_v63 = vmax.f32 %v922_v52, 0.0  ;;  %v1130_v36 = vshrl.u32 %v1129_v3, 7 }
 0x282   : > { %v1089_v0 = vadd.f32 %v1088_v49, %v1070_v58  ;;  %v1072_v39 = vmul.f32 %v1034_v61, %v960_v59 }
 0x283   : > { %v1110_v4 = vadd.f32 %v1109_v51, %v1071_v62  ;;  %v1073_v5 = vmul.f32 %v1034_v61, %v961_v63  ;;  %v925_v6 = vpop.f32.mrb[28].mxu1  ;;  %v1131_v38 = vsub.s32 %v1128_v45, %v1130_v36 }
 0x284   : > { %v1090_v8 = vadd.f32 %v1089_v0, %v1072_v39  ;;  %v926_v9 = vadd.f32 %v925_v6, %v814_v43  ;;  %v927_v50 = vpop.f32.mrb[29].mxu1 }
 0x285   : > { %v1111_v10 = vadd.f32 %v1110_v4, %v1073_v5  ;;  %v928_v11 = vadd.f32 %v927_v50, %v814_v43  ;;  %v929_v12 = vpop.f32.mrb[30].mxu1  ;;  %v1120_v43 = vstv %s378_s16 }
 0x286   : > { %v962_v13 = vmax.f32 %v926_v9, 0.0  ;;  %v930_v7 = vadd.f32 %v929_v12, %v819_v60  ;;  %v931_v14 = vpop.f32.mrb[31].mxu1 }
 0x287   : > { %v963_v16 = vmax.f32 %v928_v11, 0.0  ;;  %v932_v17 = vadd.f32 %v931_v14, %v819_v60 }
 0x288   : > { %v1074_v18 = vmul.f32 %v1039_v15, %v962_v13  ;;  %v964_v20 = vmax.f32 %v930_v7, 0.0 }
 0x289   : > { %v1075_v22 = vmul.f32 %v1039_v15, %v963_v16  ;;  %v965_v23 = vmax.f32 %v932_v17, 0.0 }
 0x28a   : > { %v1091_v24 = vadd.f32 %v1090_v8, %v1074_v18  ;;  %v1076_v25 = vmul.f32 %v1044_v21, %v964_v20 }
 0x28b   : > { %v1112_v26 = vadd.f32 %v1111_v10, %v1075_v22  ;;  %v1077_v1 = vmul.f32 %v1044_v21, %v965_v23 }
 0x28c   : > { %v1092_v27 = vadd.f32 %v1091_v24, %v1076_v25 }
 0x28d   : > { %v1113_v28 = vadd.f32 %v1112_v26, %v1077_v1 }
 0x28e   : > { %v1093_v29 = vrot.slane %v1092_v27, 4 }
 0x28f   : > { %v1114_v30 = vrot.slane %v1113_v28, 4 }
 0x290   : > { %v1094_v31 = vadd.f32 %v1093_v29, %v1092_v27 }
 0x291   : > { %v1115_v32 = vadd.f32 %v1114_v30, %v1113_v28 }
 0x292   : > { %v1095_v33 = vrot.slane %v1094_v31, 2 }
 0x293   : > { %v1116_v19 = vrot.slane %v1115_v32, 2 }
 0x294   : > { %v1096_v41 = vadd.f32 %v1095_v33, %v1094_v31 }
 0x295   : > { %v1117_v2 = vadd.f32 %v1116_v19, %v1115_v32 }
 0x296   : > { %v1097_v42 = vrot.slane %v1096_v41, 1 }
 0x297   : > { %v1118_v44 = vrot.slane %v1117_v2, 1 }
 0x298   : > { %v1098_v46 = vadd.f32 %v1097_v42, %v1096_v41 }
 0x299   : > { %v1119_v47 = vadd.f32 %v1118_v44, %v1117_v2 }
 0x29a   : > { %v1121_v48 = vadd.f32 %v1120_v43, %v1098_v46 }
 0x29b   : > { %v1122_v49 = vadd.f32 %v1120_v43, %v1119_v47 }
 0x29d   : > { %v1125_v37 = vcombine.low %v1121_v48, %v1122_v49 }
 0x29f   : > { %v1132_v51 = vrot.slane %v1125_v37, %v1131_v38 }
 0x2a1   : > { %v1139_v40 = vrot.slane %v1132_v51, %v1131_v38 }
 0x2a3   : > { %1145 = vst.msk [vmem:[%s273_s21] sm:$0x3] %vm1143_vm1, %v1139_v40 }
 0x2a4   : > { %1337 = shalt.err (!%p1334_p3)
}
 0x2a5   : > { %s1338_s14 = scalar_lea.hbm %s1823_s25, 32  ;;  %s1342_s16 = scalar_lea.hbm %s1872_s7, 64 }
 0x2a6   : > { %p1339_p4 = scmp.ne.s32.totalorder %s1823_s25, %s1338_s14  ;;  %p1343_p9 = scmp.lt.u32.totalorder %s1823_s25, %s1872_s7 }
 0x2a7   : > { %p1344_p10 = scmp.lt.u32.totalorder %s1342_s16, %s1338_s14  ;;  %p1346_p12 = scmp.lt.u32.totalorder %s1338_s14, %s1823_s25 }
 0x2a8   : > { %p1340_p7 = pnand %p1339_p4, %p1469_p5 }
 0x2a9   : > { %p1345_p11 = por %p1344_p10, %p1343_p9 }
 0x2aa   : > { %p1341_p8 = pneg %p1340_p7 }
 0x2ab   : > { %p1347_p13 = por %p1346_p12, %p1345_p11 }
 0x2ad   : > { %p1348_p0 = pnand %p1347_p13, %p1341_p8 }
 0x2af   : > { %1351 = shalt.err (!%p1348_p0)
}
 0x2b0   : > { %1281 = dma.vmem_to_hbm [thread:$0]  (%p1469_p5), %s1825_s22, 32, %s1823_s25, %s1147_s6  }
 0x2b1 PF: > { %p1287_p1 = scmp.ge.s32.totalorder %s1386_s29, 2  ;;  %s1173_s21 = sand.u32 1, %s1374_s26  }
 0x2b2   : > { %s1174_s23 = scalar_lea.sflag [#allocation4], %s1173_s21 }
 0x2b3   : > { %p1284_p2 = pnand %p1287_p1, %p1473_p6 }
 0x2b5   : > { %1369 = dma.done.wait (!%p1284_p2), %s1174_s23, 32  }
 0x2b6   : > { %1371 = vsyncadd (!%p1284_p2), %s1174_s23, 4294967264  ;;  %p18_p3 = scmp.ge.s32.totalorder %s1457_s8, 4   ;;  %s1875_s26 = smov %s1378_s27 }
 0x2b7   : > { %s1876_s27 = smov %s1382_s28  ;;  %s1877_s28 = smov %s1467_s11 }
 0x2b8   : > { %s1878_s29 = smov %s1457_s8  ;;  %20 = sbr.rel (!%p18_p3) target bundleno = 5 (0x5), region = 83 }
 0x2bf   :  { %1179 = vsyncpa [#allocation4], 1 }
 0x2c0   :  { %1181 = vsyncpa [#allocation4 + $0x1], 1 }

</bundles_post_ra>
